<compile_context>
chip_gen: v6e
topology: v6e:2x2x1
jax: 0.10.0
libtpu: 0.0.40
codegen_flags: <defaults>
</compile_context>

<pallas_src>
from functools import partial

import jax
import jax.numpy as jnp
from jax.experimental import pallas as pl
from jax.experimental.pallas import tpu as pltpu

PATCH = 4        # patch size for the stand-in patch-embed backbone
SIZE_OUT = 32    # backbone.size_out


def _pick_row_tile(L, din, *, buf_bytes=4 << 20):
    """Largest row tile that divides L, is a multiple of 16 (bf16 sublane
    packing), and keeps one double-buffered bf16 tile within the VMEM budget."""
    cap = (buf_bytes // (din * 2)) & ~15
    cap = max(16, min(2048, cap))
    if L <= cap:
        return L
    for t in range(cap, 15, -16):
        if L % t == 0:
            return t
    return L  # fallback: single tile (correctness over perf)


def _base_model_kernel(patches_ref, w_embed_ref, w_head_ref, bias_ref,
                       out_ref, acc_ref, *, inv_l):
    """Fused backbone(patch-embed) + head(mean-pool + linear).

    patches_ref : (1, TL, Din)  bf16   streamed row tile (one batch element)
    w_embed_ref : (Din, Dpad)   f32    lane-padded embed weight (resident)
    w_head_ref  : (1, Dpad)     f32    lane-padded head weight  (resident)
    bias_ref    : (1, Dpad)     f32    (b_embed @ w_head + b_head) broadcast
    out_ref     : (1, 1, Dpad)  f32    lane-dense output slab for this batch
    acc_ref     : (1, Din)      f32    running token-row sum (scratch)
    """
    t = pl.program_id(1)

    @pl.when(t == 0)
    def _init():
        acc_ref[...] = jnp.zeros_like(acc_ref)

    # Streaming mean-pool: running sum of this tile's patch rows (f32 accum).
    rows = patches_ref[0].astype(jnp.float32)                  # (TL, Din)
    acc_ref[...] += jnp.sum(rows, axis=0, keepdims=True)       # (1, Din)

    @pl.when(t == pl.num_programs(1) - 1)
    def _finalize():
        # mean-pooled patch vector -> patch-embed (MXU) -> head linear as a
        # VPU lane-reduce (avoids an N=1 MXU matmul), + folded biases.
        pooled = jnp.dot(acc_ref[...] * inv_l, w_embed_ref[...],
                         preferred_element_type=jnp.float32)   # (1, Dpad)
        y = jnp.sum(pooled * w_head_ref[...], axis=-1, keepdims=True)  # (1, 1)
        out_ref[...] = jnp.broadcast_to(y, out_ref.shape) + bias_ref[...][None]


def base_model_forward(x, params):
    """x: (B, C, H, W) float32 NCHW. Returns (B, 1) float32."""
    B, C, H, W = x.shape
    P = PATCH
    assert H % P == 0 and W % P == 0
    L = (H // P) * (W // P)
    Din = C * P * P
    D = SIZE_OUT
    Dpad = ((D + 127) // 128) * 128

    # Glue: non-overlapping P x P patches -> (B, L, C*P*P), cast to bf16
    # (accumulation stays f32 in-kernel).
    # TODO(synk): a manual-DMA gather of (C,P,P) slabs (memory_space=pl.ANY)
    # would avoid materializing this rearrangement in HBM entirely;
    # allow_input_fusion below lets XLA fuse it into the kernel's input.
    patches = (x.reshape(B, C, H // P, P, W // P, P)
                 .transpose(0, 2, 4, 1, 3, 5)
                 .reshape(B, L, Din)).astype(jnp.bfloat16)

    # One-time weight prep: lane-pad to 128 columns; fold b_embed (which the
    # mean-pool turns into the constant b_embed @ w_head) together with b_head.
    w_embed = params["w_embed"].astype(jnp.float32)                 # (Din, D)
    w_head = params["w_head"].astype(jnp.float32)                   # (D, 1)
    b_embed = params["b_embed"].reshape(1, D).astype(jnp.float32)
    b_head = params["b_head"].reshape(1, 1).astype(jnp.float32)

    w_embed_pad = jnp.zeros((Din, Dpad), jnp.float32).at[:, :D].set(w_embed)
    w_head_pad = jnp.zeros((1, Dpad), jnp.float32).at[0, :D].set(w_head[:, 0])
    bias_row = jnp.full((1, Dpad), (b_embed @ w_head + b_head)[0, 0],
                        jnp.float32)

    TL = _pick_row_tile(L, Din)
    grid = (B, L // TL)
    kernel = partial(_base_model_kernel, inv_l=1.0 / L)

    out = pl.pallas_call(
        kernel,
        out_shape=jax.ShapeDtypeStruct((B, 1, Dpad), jnp.float32),
        grid_spec=pltpu.PrefetchScalarGridSpec(
            num_scalar_prefetch=0,
            grid=grid,
            in_specs=[
                pl.BlockSpec((1, TL, Din), lambda b, t: (b, t, 0)),   # streamed
                pl.BlockSpec((Din, Dpad), lambda b, t: (0, 0)),       # resident
                pl.BlockSpec((1, Dpad), lambda b, t: (0, 0)),         # resident
                pl.BlockSpec((1, Dpad), lambda b, t: (0, 0)),         # resident
            ],
            out_specs=pl.BlockSpec((1, 1, Dpad), lambda b, t: (b, 0, 0)),
            scratch_shapes=[pltpu.VMEM((1, Din), jnp.float32)],
        ),
        compiler_params=pltpu.CompilerParams(
            # batch axis feeds both v7x TensorCores; row-tile axis carries the
            # pooled-sum accumulator, so it must stay "arbitrary".
            dimension_semantics=("parallel", "arbitrary"),
            # 32 MiB scoped VMEM is safe on v5e (128 MiB phys), v6e (128 MiB)
            # and v7x (64 MiB phys); tiles are sized to stay well under it.
            vmem_limit_bytes=32 * 1024 * 1024,
            # let XLA fuse the patch rearrangement into the kernel's input.
            allow_input_fusion=[True, False, False, False],
        ),
    )(patches, w_embed_pad, w_head_pad, bias_row)

    return out[:, 0, :1]                                             # (B, 1)


def base_model_reference(x, params):
    """Pure-JAX reference with the original op ordering (f32 throughout)."""
    B, C, H, W = x.shape
    P = PATCH
    L = (H // P) * (W // P)
    Din = C * P * P
    patches = (x.reshape(B, C, H // P, P, W // P, P)
                 .transpose(0, 2, 4, 1, 3, 5)
                 .reshape(B, L, Din)).astype(jnp.float32)
    tokens = patches @ params["w_embed"] + params["b_embed"]        # (B, L, D)
    pooled = tokens.mean(axis=1)                                    # (B, D)
    return pooled @ params["w_head"] + params["b_head"]             # (B, 1)


def init_params(key, C):
    """Deterministic synthetic parameters (trunc_normal std=0.02 ~ normal*0.02,
    biases zero, matching the module's _init_weight for Linear layers)."""
    Din = C * PATCH * PATCH
    k1, k2 = jax.random.split(key)
    return {
        "w_embed": jax.random.normal(k1, (Din, SIZE_OUT), jnp.float32) * 0.02,
        "b_embed": jnp.zeros((1, SIZE_OUT), jnp.float32),
        "w_head": jax.random.normal(k2, (SIZE_OUT, 1), jnp.float32) * 0.02,
        "b_head": jnp.zeros((1, 1), jnp.float32),
    }


if __name__ == "__main__":
    key = jax.random.PRNGKey(0)
    kx, kp = jax.random.split(key)

    B, C, H, W = 2, 4, 16, 16
    x = jax.random.normal(kx, (B, C, H, W), jnp.float32)
    params = init_params(kp, C)

    # jit so the patch-rearrangement producer lives in the same XLA program
    # as the kernel (required for allow_input_fusion to take effect).
    out = jax.block_until_ready(jax.jit(base_model_forward)(x, params))

    assert out.shape == (B, 1), out.shape
    assert out.dtype == jnp.float32
    assert bool(jnp.all(jnp.isfinite(out)))

    ref = base_model_reference(x, params)
    assert bool(jnp.allclose(out, ref, atol=5e-2, rtol=5e-2)), (out, ref)

    print("KERNEL_OK")
</pallas_src>

<mosaic_0001>
module attributes {stable_mosaic.version = 11 : i64} {
  func.func @_base_model_kernel(%arg0: i32, %arg1: i32, %arg2: memref<1x16x64xbf16, #tpu.memory_space<vmem>>, %arg3: memref<64x128xf32, #tpu.memory_space<vmem>>, %arg4: memref<1x128xf32, #tpu.memory_space<vmem>>, %arg5: memref<1x128xf32, #tpu.memory_space<vmem>>, %arg6: memref<1x1x128xf32, #tpu.memory_space<vmem>>, %arg7: memref<1x64xf32, #tpu.memory_space<vmem>>) attributes {dimension_semantics = [#tpu.dimension_semantics<parallel>, #tpu.dimension_semantics<arbitrary>], iteration_bounds = array<i64: 2, 1>, scalar_prefetch = 0 : i64, scratch_operands = 1 : i64, tpu.core_type = #tpu.core_type<tc>, window_params = [{transform_indices = @transform_0, window_bounds = array<i64: 1, 16, 64>}, {pipeline_mode = #tpu.pipeline_mode<synchronous>, transform_indices = @transform_1, window_bounds = array<i64: 64, 128>}, {pipeline_mode = #tpu.pipeline_mode<synchronous>, transform_indices = @transform_2, window_bounds = array<i64: 1, 128>}, {pipeline_mode = #tpu.pipeline_mode<synchronous>, transform_indices = @transform_3, window_bounds = array<i64: 1, 128>}, {transform_indices = @transform_4, window_bounds = array<i64: 1, 1, 128>}]} {
    %c0_i32 = arith.constant 0 : i32
    %0 = arith.cmpi eq, %arg1, %c0_i32 : i32
    %1 = arith.extui %0 : i1 to i32
    %c0_i32_0 = arith.constant 0 : i32
    %2 = arith.cmpi ne, %1, %c0_i32_0 : i32
    scf.if %2 {
      %cst_9 = arith.constant 0.000000e+00 : f32
      %14 = vector.broadcast %cst_9 : f32 to vector<1x64xf32>
      %c0_10 = arith.constant 0 : index
      %c0_11 = arith.constant 0 : index
      %15 = vector.load %arg7[%c0_10, %c0_11] : memref<1x64xf32, #tpu.memory_space<vmem>>, vector<1x64xf32>
      tpu.vector_store %arg7[%c0_10, %c0_11], %14 {strides = array<i32>} : memref<1x64xf32, #tpu.memory_space<vmem>>, vector<1x64xf32>,
    } else {
    }
    %c0 = arith.constant 0 : index
    %c0_1 = arith.constant 0 : index
    %c0_2 = arith.constant 0 : index
    %3 = vector.load %arg2[%c0, %c0_1, %c0_2] : memref<1x16x64xbf16, #tpu.memory_space<vmem>>, vector<1x16x64xbf16>
    %4 = vector.shape_cast %3 : vector<1x16x64xbf16> to vector<16x64xbf16>
    %5 = arith.extf %4 : vector<16x64xbf16> to vector<16x64xf32>
    %c0_3 = arith.constant 0 : index
    %c0_4 = arith.constant 0 : index
    %6 = vector.load %arg7[%c0_3, %c0_4] : memref<1x64xf32, #tpu.memory_space<vmem>>, vector<1x64xf32>
    %cst = arith.constant dense<0.000000e+00> : vector<64xf32>
    %7 = vector.multi_reduction <add>, %5, %cst [0] : vector<16x64xf32> to vector<64xf32>
    %8 = vector.shape_cast %7 : vector<64xf32> to vector<1x64xf32>
    %9 = arith.addf %6, %8 : vector<1x64xf32>
    %c0_5 = arith.constant 0 : index
    %c0_6 = arith.constant 0 : index
    %10 = vector.load %arg7[%c0_5, %c0_6] : memref<1x64xf32, #tpu.memory_space<vmem>>, vector<1x64xf32>
    tpu.vector_store %arg7[%c0_5, %c0_6], %9 {strides = array<i32>} : memref<1x64xf32, #tpu.memory_space<vmem>>, vector<1x64xf32>,
    %c0_i32_7 = arith.constant 0 : i32
    %11 = arith.cmpi eq, %arg1, %c0_i32_7 : i32
    %12 = arith.extui %11 : i1 to i32
    %c0_i32_8 = arith.constant 0 : i32
    %13 = arith.cmpi ne, %12, %c0_i32_8 : i32
    scf.if %13 {
      %c0_9 = arith.constant 0 : index
      %c0_10 = arith.constant 0 : index
      %14 = vector.load %arg7[%c0_9, %c0_10] : memref<1x64xf32, #tpu.memory_space<vmem>>, vector<1x64xf32>
      %cst_11 = arith.constant 6.250000e-02 : f32
      %15 = vector.broadcast %cst_11 : f32 to vector<1x64xf32>
      %16 = arith.mulf %14, %15 : vector<1x64xf32>
      %c0_12 = arith.constant 0 : index
      %c0_13 = arith.constant 0 : index
      %17 = vector.load %arg3[%c0_12, %c0_13] : memref<64x128xf32, #tpu.memory_space<vmem>>, vector<64x128xf32>
      %cst_14 = arith.constant dense<0.000000e+00> : vector<1x128xf32>
      %18 = tpu.matmul %16, %17, %cst_14 {dimension_numbers = #tpu.dot_dimension_numbers<[1], [0], [0], [1], [0, 0, 1, 1], [], []>} : vector<1x64xf32>, vector<64x128xf32>, vector<1x128xf32> -> vector<1x128xf32>
      %c0_15 = arith.constant 0 : index
      %c0_16 = arith.constant 0 : index
      %19 = vector.load %arg4[%c0_15, %c0_16] : memref<1x128xf32, #tpu.memory_space<vmem>>, vector<1x128xf32>
      %20 = arith.mulf %18, %19 : vector<1x128xf32>
      %cst_17 = arith.constant dense<0.000000e+00> : vector<1xf32>
      %21 = vector.multi_reduction <add>, %20, %cst_17 [1] : vector<1x128xf32> to vector<1xf32>
      %22 = vector.shape_cast %21 : vector<1xf32> to vector<1x1xf32>
      %23 = vector.shape_cast %22 : vector<1x1xf32> to vector<1x1x1xf32>
      %24 = vector.broadcast %23 : vector<1x1x1xf32> to vector<1x1x128xf32>
      %c0_18 = arith.constant 0 : index
      %c0_19 = arith.constant 0 : index
      %25 = vector.load %arg5[%c0_18, %c0_19] : memref<1x128xf32, #tpu.memory_space<vmem>>, vector<1x128xf32>
      %26 = vector.shape_cast %25 : vector<1x128xf32> to vector<1x1x128xf32>
      %27 = arith.addf %24, %26 : vector<1x1x128xf32>
      %c0_20 = arith.constant 0 : index
      %c0_21 = arith.constant 0 : index
      %c0_22 = arith.constant 0 : index
      %28 = vector.load %arg6[%c0_20, %c0_21, %c0_22] : memref<1x1x128xf32, #tpu.memory_space<vmem>>, vector<1x1x128xf32>
      tpu.vector_store %arg6[%c0_20, %c0_21, %c0_22], %27 {strides = array<i32>} : memref<1x1x128xf32, #tpu.memory_space<vmem>>, vector<1x1x128xf32>,
    } else {
    }
    return
  }
  func.func @transform_0(%arg0: i32, %arg1: i32) -> (i32, i32, i32) {
    %c0_i32 = arith.constant 0 : i32
    %c0_i32_0 = arith.constant 0 : i32
    return %arg0, %arg1, %c0_i32 : i32, i32, i32
  }
  func.func @transform_1(%arg0: i32, %arg1: i32) -> (i32, i32) {
    %c0_i32 = arith.constant 0 : i32
    %c0_i32_0 = arith.constant 0 : i32
    %c0_i32_1 = arith.constant 0 : i32
    return %c0_i32, %c0_i32_0 : i32, i32
  }
  func.func @transform_2(%arg0: i32, %arg1: i32) -> (i32, i32) {
    %c0_i32 = arith.constant 0 : i32
    %c0_i32_0 = arith.constant 0 : i32
    %c0_i32_1 = arith.constant 0 : i32
    return %c0_i32, %c0_i32_0 : i32, i32
  }
  func.func @transform_3(%arg0: i32, %arg1: i32) -> (i32, i32) {
    %c0_i32 = arith.constant 0 : i32
    %c0_i32_0 = arith.constant 0 : i32
    %c0_i32_1 = arith.constant 0 : i32
    return %c0_i32, %c0_i32_0 : i32, i32
  }
  func.func @transform_4(%arg0: i32, %arg1: i32) -> (i32, i32, i32) {
    %c0_i32 = arith.constant 0 : i32
    %c0_i32_0 = arith.constant 0 : i32
    %c0_i32_1 = arith.constant 0 : i32
    return %arg0, %c0_i32, %c0_i32_0 : i32, i32, i32
  }
}

</mosaic_0001>

<bundles_post_ra>
// kernel: base_model_forward.1
= control target key start
LH: loop header
LB: loop body
LE: loop exit
PB: predicated region body
PF: predicated region fallthrough
CT: control target
= control target key end

     0   :  { %s522_s15 = smov 0   ;;  %s524_s16 = smov 0   ;;  %s594_s0 = inlined_call_operand.vmem [shape: bf16[2,16,64], index: 0, kind: input, shape index: {}]   ;;  %s595_s1 = inlined_call_operand.vmem [shape: f32[64,128], index: 1, kind: input, shape index: {}]   ;;  %s596_s2 = inlined_call_operand.vmem [shape: f32[1,128], index: 2, kind: input, shape index: {}]   ;;  %s597_s3 = inlined_call_operand.vmem [shape: f32[1,128], index: 3, kind: input, shape index: {}]   ;;  %s598_s4 = inlined_call_operand.vmem [shape: f32[2,1,128], index: 4, kind: output, shape index: {}]  }
   0x1   :  { %s526_s17 = smov 0  }
   0x2 LB: > { %s26_s18 = sadd.s32 1, %s489_s16  ;;  %p406_p0 = scmp.ge.s32.totalorder %s493_s17, 1  ;;  %s493_s17 = sphi %s526_s17, %s14_s17   ;;  %s489_s16 = sphi %s524_s16, %s600_s16   ;;  %s485_s15 = sphi %s522_s15, %s599_s15  }
   0x3   : > { %p28_p1 = scmp.ge.s32.totalorder %s26_s18, 2  ;;  %p181_p2 = scmp.lt.s32.totalorder %s493_s17, 3 }
   0x5   : > { %s602_s18 = smov (%p28_p1, %s26_s18), 0  ;;  %p182_p3 = pnand %p406_p0, %p181_p2 }
   0x6   : > { %p210_p4 = scmp.lt.s32.totalorder (!%p182_p3), %s485_s15, 1 }
   0x7   : > { %185 = sbr.rel (%p182_p3) target bundleno = 382 (0x17e), region = 36 }
   0xc   : > { %v258_v0 = vld [vmem:[%s595_s1 + $0x38] sm:$0xff]  ;;  %v495_v1 = vmov 0.0   ;;  %v257_v2 = vld [vmem:[%s595_s1 + $0x30] sm:$0xff]  ;;  %vm496_vm0 = vmmov 0   ;;  %vm226_vm1 = vcmask 516096   ;;  %s604_s15 = smov (!%p210_p4, %s485_s15), 1 }
   0xd   : > { %426 = vmatprep.subr.mxu0 %v495_v1  ;;  %442 = vmatprep.mubr.msk.f32.mxu0 %vm496_vm0, %v495_v1  ;;  %227 = vst.msk [vmem:[#allocation2] sm:$0x1] %vm226_vm1, %v495_v1  ;;  %v256_v3 = vld [vmem:[%s595_s1 + $0x28] sm:$0xff]  ;;  %s412_s25 = sshll.u32 %s604_s15, 3  ;;  %v255_v4 = vld [vmem:[%s595_s1 + $0x20] sm:$0xff]  ;;  %vm233_vm2 = vcmask 523264   ;;  %s221_s23 = scalar_lea.vmem %s598_s4, %s604_s15 }
   0xe   : > { %427 = vmatpush3.msra.mxu0 %v258_v0  ;;  %s217_s30 = scalar_lea.vmem %s594_s0, %s412_s25  ;;  %v254_v6 = vld [vmem:[%s595_s1 + $0x18] sm:$0xff]  ;;  %v253_v9 = vld [vmem:[%s595_s1 + $0x10] sm:$0xff]  ;;  %v252_v13 = vld [vmem:[%s595_s1 + $0x8] sm:$0xff]  ;;  %vm334_vm3 = vcmask 1040384  }
   0xf   : > { %428 = vmatprep.subr.mxu0 %v495_v1  ;;  %v414_v5 = vld [vmem:[%s217_s30] sm:$0xff]  }
  0x10   : > { %429 = vmatpush3.msra.mxu0 %v257_v2  ;;  %v415_v7 = vunpack.c.l.bf16 %v414_v5  ;;  %v416_v8 = vunpack.c.h.bf16 %v414_v5  ;;  %v251_v15 = vld [vmem:[%s595_s1] sm:$0xff] }
  0x11   : > { %430 = vmatprep.subr.mxu0 %v495_v1  ;;  %v332_v25 = vld [vmem:[%s596_s2] sm:$0x1] }
  0x12   : > { %431 = vmatpush3.msra.mxu0 %v256_v3  ;;  %v234_v10 = vsel %vm233_vm2, %v415_v7, 0.0  ;;  %v235_v11 = vsel %vm233_vm2, %v416_v8, 0.0  ;;  %v338_v30 = vld [vmem:[%s597_s3] sm:$0x1] }
  0x13   : > { %432 = vmatprep.subr.mxu0 %v495_v1  ;;  %v236_v12 = vadd.f32 %v235_v11, %v234_v10 }
  0x14   : > { %433 = vmatpush3.msra.mxu0 %v255_v4  ;;  %v232_v20 = vld [vmem:[#allocation2] sm:$0x1] }
  0x15   : > { %434 = vmatprep.subr.mxu0 %v495_v1  ;;  %v237_v14 = vrot.slane %v236_v12, 4 }
  0x16   : > { %435 = vmatpush3.msra.mxu0 %v254_v6 }
  0x17   : > { %436 = vmatprep.subr.mxu0 %v495_v1  ;;  %v238_v16 = vadd.f32 %v237_v14, %v236_v12 }
  0x18   : > { %437 = vmatpush3.msra.mxu0 %v253_v9 }
  0x19   : > { %438 = vmatprep.subr.mxu0 %v495_v1  ;;  %v239_v17 = vrot.slane %v238_v16, 2 }
  0x1a   : > { %439 = vmatpush3.msra.mxu0 %v252_v13 }
  0x1b   : > { %440 = vmatprep.subr.mxu0 %v495_v1  ;;  %v240_v18 = vadd.f32 %v239_v17, %v238_v16 }
  0x1c   : > { %441 = vmatpush3.msra.mxu0 %v251_v15 }
  0x1d   : > { %v241_v19 = vrot.slane %v240_v18, 1 }
  0x1f   : > { %v242_v21 = vadd.f32 %v241_v19, %v240_v18 }
  0x21   : > { %v243_v22 = vadd.f32 %v242_v21, %v232_v20 }
  0x23   : > { %245 = vst.msk [vmem:[#allocation2] sm:$0x1] %vm226_vm1, %v243_v22 }
  0x2a   : > { %v249_v23 = vld [vmem:[#allocation2] sm:$0x1] }
  0x2b   : > { %v250_v24 = vmul.f32 0.0625, %v249_v23 }
  0x2d   : > { %443 = vmatmul.mubr.msk.f32.vlgmr.msra.gmra.mxu0 %vm233_vm2, %v250_v24 }
  0xed   : > { %v328_v26 = vpop.f32.mrf.mxu0 }
  0xee   : > { %v333_v27 = vmul.f32 %v332_v25, %v328_v26 }
  0xef   : > { %v444_v28 = vpop.f32.mrf.mxu0 }
  0xf0   : > { %v335_v29 = vsel %vm334_vm3, %v333_v27, 0.0 }
  0xf1   : > { %336 = vadd.xlane.f32.xlu0 %v335_v29 }
 0x17a   : > { %v337_v31 = vpop.xlane.xlu0 %336 }
 0x17b   : > { %v339_v32 = vadd.f32 %v338_v30, %v337_v31 }
 0x17d   : > { %340 = vst [vmem:[%s221_s23] sm:$0x1] %v339_v32 }
 0x17e PF: > { %s14_s17 = sadd.s32 1, %s493_s17   ;;  %s599_s15 = smov %s489_s16 }
 0x17f   : > { %p11_p5 = scmp.ge.s32.totalorder %s14_s17, 4   ;;  %s600_s16 = smov %s602_s18 }
 0x181   :  { %13 = sbr.rel (!%p11_p5) target bundleno = 2 (0x2), region = 74 }

</bundles_post_ra>
